<compile_context>
chip_gen: v7x
topology: tpu7x:2x2x1
jax: 0.10.0
libtpu: 0.0.40
codegen_flags: <defaults>
</compile_context>

<pallas_src>
import functools

import jax
import jax.numpy as jnp
from jax.experimental import pallas as pl
from jax.experimental.pallas import tpu as pltpu


def _resblock_kernel(x_ref, rhs1_ref, b1_ref, rhs2_ref, b2_ref, out_ref,
                     xpad_ref, hpad_ref, *, H, W, Cin, Hid, Cout):
    # x_ref    : (1, H, W*Cin)          unpadded input rows (one batch element)
    # rhs1_ref : (3, (W+2)*Cin, W*Hid)  banded conv1 weights (one per kernel row)
    # b1_ref   : (1, W*Hid)             conv1 bias tiled across W
    # rhs2_ref : (3, (W+2)*Hid, W*Cout) banded conv2 weights
    # b2_ref   : (1, W*Cout)            conv2 bias tiled across W
    # out_ref  : (1, H, W*Cout)
    # xpad_ref : (H+2, (W+2)*Cin)       VMEM scratch, zero-halo padded input
    # hpad_ref : (H+2, (W+2)*Hid)       VMEM scratch, zero-halo padded hidden act
    wc_in, wc_hid, wc_out = W * Cin, W * Hid, W * Cout
    wp_in, wp_hid = (W + 2) * Cin, (W + 2) * Hid

    x = x_ref[0]                                   # (H, W*Cin); reused for residual

    # ---- zero-padded input (1-pixel halo) built in VMEM scratch ---------------
    # Only the border is zeroed; the interior is fully overwritten right after.
    xpad_ref[0:1, :] = jnp.zeros((1, wp_in), jnp.float32)
    xpad_ref[H + 1:H + 2, :] = jnp.zeros((1, wp_in), jnp.float32)
    xpad_ref[:, 0:Cin] = jnp.zeros((H + 2, Cin), jnp.float32)
    xpad_ref[:, wp_in - Cin:wp_in] = jnp.zeros((H + 2, Cin), jnp.float32)
    xpad_ref[1:H + 1, Cin:Cin + wc_in] = x.astype(jnp.float32)

    # ---- conv1 + relu: 3 banded matmuls (one per kernel row dy) ----------------
    acc1 = jnp.zeros((H, wc_hid), jnp.float32)
    for dy in range(3):                            # static, fully unrolled
        acc1 = acc1 + jnp.dot(xpad_ref[dy:dy + H, :], rhs1_ref[dy],
                              preferred_element_type=jnp.float32)
    h = jnp.maximum(acc1 + b1_ref[...], 0.0)       # (H, W*Hid), bias added once

    # ---- zero-padded hidden activation -----------------------------------------
    hpad_ref[0:1, :] = jnp.zeros((1, wp_hid), jnp.float32)
    hpad_ref[H + 1:H + 2, :] = jnp.zeros((1, wp_hid), jnp.float32)
    hpad_ref[:, 0:Hid] = jnp.zeros((H + 2, Hid), jnp.float32)
    hpad_ref[:, wp_hid - Hid:wp_hid] = jnp.zeros((H + 2, Hid), jnp.float32)
    hpad_ref[1:H + 1, Hid:Hid + wc_hid] = h

    # ---- conv2 + relu -----------------------------------------------------------
    acc2 = jnp.zeros((H, wc_out), jnp.float32)
    for dy in range(3):
        acc2 = acc2 + jnp.dot(hpad_ref[dy:dy + H, :], rhs2_ref[dy],
                              preferred_element_type=jnp.float32)
    y = jnp.maximum(acc2 + b2_ref[...], 0.0)       # (H, W*Cout)

    # ---- residual add (ReLU applied BEFORE the add, as in the nn.Module) -------
    # Row-major flattening of (W, C) matches for x and y since Cout == Cin.
    out_ref[0] = (y + x.astype(jnp.float32)).astype(out_ref.dtype)


def _make_banded_weights(w_hwio, W):
    """(3, 3, Ci, Co) HWIO weights -> (3, (W+2)*Ci, W*Co) banded matrices.

    rhs[dy][(j+dx)*Ci + ci, j*Co + co] == w_hwio[dy, dx, ci, co], so that
    (padded_image_row @ rhs[dy]) yields, for every output pixel j, the full
    contribution of kernel row dy of the 3x3 convolution.
    """
    _, _, Ci, Co = w_hwio.shape
    rhs = jnp.zeros((3, (W + 2) * Ci, W * Co), dtype=w_hwio.dtype)
    for dy in range(3):
        for dx in range(3):
            for j in range(W):
                rhs = rhs.at[dy,
                             (j + dx) * Ci:(j + dx + 1) * Ci,
                             j * Co:(j + 1) * Co].set(w_hwio[dy, dx])
    return rhs


def residual_block_nhwc(x, w1, b1, w2, b2):
    """x: (N, H, W, Cin) f32; w1: (3,3,Cin,Hid), w2: (3,3,Hid,Cout) in HWIO."""
    N, H, W, Cin = x.shape
    Hid = w1.shape[-1]
    Cout = w2.shape[-1]
    assert Cout == Cin, "residual add requires out_channels == in_channels"
    assert w1.shape[:2] == (3, 3) and w2.shape[:2] == (3, 3)

    # Lane-dense row layout + banded weights / tiled biases (all wrapper-side,
    # outside the kernel — pure layout plumbing).
    x_rows = x.reshape(N, H, W * Cin)
    rhs1 = _make_banded_weights(w1, W)                    # (3, (W+2)*Cin, W*Hid)
    rhs2 = _make_banded_weights(w2, W)                    # (3, (W+2)*Hid, W*Cout)
    b1_rows = jnp.tile(b1, W).reshape(1, W * Hid)
    b2_rows = jnp.tile(b2, W).reshape(1, W * Cout)

    kernel = functools.partial(_resblock_kernel, H=H, W=W,
                               Cin=Cin, Hid=Hid, Cout=Cout)

    out_rows = pl.pallas_call(
        kernel,
        out_shape=jax.ShapeDtypeStruct((N, H, W * Cout), x.dtype),
        grid=(N,),
        in_specs=[
            pl.BlockSpec((1, H, W * Cin), lambda n: (n, 0, 0)),
            pl.BlockSpec((3, (W + 2) * Cin, W * Hid), lambda n: (0, 0, 0)),
            pl.BlockSpec((1, W * Hid), lambda n: (0, 0)),
            pl.BlockSpec((3, (W + 2) * Hid, W * Cout), lambda n: (0, 0, 0)),
            pl.BlockSpec((1, W * Cout), lambda n: (0, 0)),
        ],
        out_specs=pl.BlockSpec((1, H, W * Cout), lambda n: (n, 0, 0)),
        scratch_shapes=[
            pltpu.VMEM((H + 2, (W + 2) * Cin), jnp.float32),
            pltpu.VMEM((H + 2, (W + 2) * Hid), jnp.float32),
        ],
        compiler_params=pltpu.CompilerParams(
            dimension_semantics=("parallel",)),
    )(x_rows, rhs1, b1_rows, rhs2, b2_rows)

    return out_rows.reshape(N, H, W, Cout)


def residual_block_nchw(x_nchw, w1_oihw, b1, w2_oihw, b2):
    """PyTorch-layout entry point: x (N, Cin, H, W), conv weights (Cout, Cin, 3, 3)."""
    x = jnp.transpose(x_nchw, (0, 2, 3, 1))
    w1 = jnp.transpose(w1_oihw, (2, 3, 1, 0))
    w2 = jnp.transpose(w2_oihw, (2, 3, 1, 0))
    out = residual_block_nhwc(x, w1, b1, w2, b2)
    return jnp.transpose(out, (0, 3, 1, 2))


def _reference_nchw(x, w1, b1, w2, b2):
    dn = ("NCHW", "OIHW", "NCHW")
    h = jax.lax.conv_general_dilated(x, w1, (1, 1), "SAME", dimension_numbers=dn)
    h = jnp.maximum(h + b1[None, :, None, None], 0.0)
    y = jax.lax.conv_general_dilated(h, w2, (1, 1), "SAME", dimension_numbers=dn)
    return jnp.maximum(y + b2[None, :, None, None], 0.0) + x


if __name__ == "__main__":
    # Module config: in_channels=4, hidden=8, out_channels=4 (residual needs in==out)
    N, H, W = 2, 16, 16
    Cin, Hid, Cout = 4, 8, 4

    key = jax.random.PRNGKey(0)
    k_x, k_w1, k_b1, k_w2, k_b2 = jax.random.split(key, 5)

    x = jax.random.normal(k_x, (N, Cin, H, W), dtype=jnp.float32)
    w1 = jax.random.normal(k_w1, (Hid, Cin, 3, 3), dtype=jnp.float32) * 0.1
    b1 = jax.random.normal(k_b1, (Hid,), dtype=jnp.float32) * 0.1
    w2 = jax.random.normal(k_w2, (Cout, Hid, 3, 3), dtype=jnp.float32) * 0.1
    b2 = jax.random.normal(k_b2, (Cout,), dtype=jnp.float32) * 0.1

    out = residual_block_nchw(x, w1, b1, w2, b2)
    out = jax.block_until_ready(out)

    ref = _reference_nchw(x, w1, b1, w2, b2)
    assert out.shape == (N, Cout, H, W)
    assert jnp.allclose(out, ref, atol=1e-4, rtol=1e-4), "mismatch vs reference"

    print("KERNEL_OK")
</pallas_src>

<mosaic_0001>
module attributes {stable_mosaic.version = 11 : i64} {
  func.func @_resblock_kernel(%arg0: i32, %arg1: memref<1x16x64xf32, #tpu.memory_space<vmem>>, %arg2: memref<3x72x128xf32, #tpu.memory_space<vmem>>, %arg3: memref<1x128xf32, #tpu.memory_space<vmem>>, %arg4: memref<3x144x64xf32, #tpu.memory_space<vmem>>, %arg5: memref<1x64xf32, #tpu.memory_space<vmem>>, %arg6: memref<1x16x64xf32, #tpu.memory_space<vmem>>, %arg7: memref<18x72xf32, #tpu.memory_space<vmem>>, %arg8: memref<18x144xf32, #tpu.memory_space<vmem>>) attributes {dimension_semantics = [#tpu.dimension_semantics<parallel>], iteration_bounds = array<i64: 2>, scalar_prefetch = 0 : i64, scratch_operands = 2 : i64, tpu.core_type = #tpu.core_type<tc>, window_params = [{transform_indices = @transform_0, window_bounds = array<i64: 1, 16, 64>}, {pipeline_mode = #tpu.pipeline_mode<synchronous>, transform_indices = @transform_1, window_bounds = array<i64: 3, 72, 128>}, {pipeline_mode = #tpu.pipeline_mode<synchronous>, transform_indices = @transform_2, window_bounds = array<i64: 1, 128>}, {pipeline_mode = #tpu.pipeline_mode<synchronous>, transform_indices = @transform_3, window_bounds = array<i64: 3, 144, 64>}, {pipeline_mode = #tpu.pipeline_mode<synchronous>, transform_indices = @transform_4, window_bounds = array<i64: 1, 64>}, {transform_indices = @transform_5, window_bounds = array<i64: 1, 16, 64>}]} {
    %c0 = arith.constant 0 : index
    %c0_0 = arith.constant 0 : index
    %c0_1 = arith.constant 0 : index
    %0 = vector.load %arg1[%c0, %c0_0, %c0_1] : memref<1x16x64xf32, #tpu.memory_space<vmem>>, vector<1x16x64xf32>
    %1 = vector.shape_cast %0 : vector<1x16x64xf32> to vector<16x64xf32>
    %cst = arith.constant 0.000000e+00 : f32
    %2 = vector.broadcast %cst : f32 to vector<1x72xf32>
    %c0_2 = arith.constant 0 : index
    %c0_3 = arith.constant 0 : index
    %3 = vector.load %arg7[%c0_2, %c0_3] : memref<18x72xf32, #tpu.memory_space<vmem>>, vector<1x72xf32>
    tpu.vector_store %arg7[%c0_2, %c0_3], %2 {strides = array<i32>} : memref<18x72xf32, #tpu.memory_space<vmem>>, vector<1x72xf32>,
    %cst_4 = arith.constant 0.000000e+00 : f32
    %4 = vector.broadcast %cst_4 : f32 to vector<1x72xf32>
    %c17 = arith.constant 17 : index
    %c0_5 = arith.constant 0 : index
    %5 = vector.load %arg7[%c17, %c0_5] : memref<18x72xf32, #tpu.memory_space<vmem>>, vector<1x72xf32>
    tpu.vector_store %arg7[%c17, %c0_5], %4 {strides = array<i32>} : memref<18x72xf32, #tpu.memory_space<vmem>>, vector<1x72xf32>,
    %cst_6 = arith.constant 0.000000e+00 : f32
    %6 = vector.broadcast %cst_6 : f32 to vector<18x4xf32>
    %c0_7 = arith.constant 0 : index
    %c0_8 = arith.constant 0 : index
    %7 = vector.load %arg7[%c0_7, %c0_8] : memref<18x72xf32, #tpu.memory_space<vmem>>, vector<18x4xf32>
    tpu.vector_store %arg7[%c0_7, %c0_8], %6 {strides = array<i32>} : memref<18x72xf32, #tpu.memory_space<vmem>>, vector<18x4xf32>,
    %cst_9 = arith.constant 0.000000e+00 : f32
    %8 = vector.broadcast %cst_9 : f32 to vector<18x4xf32>
    %c0_10 = arith.constant 0 : index
    %c68 = arith.constant 68 : index
    %9 = vector.load %arg7[%c0_10, %c68] : memref<18x72xf32, #tpu.memory_space<vmem>>, vector<18x4xf32>
    tpu.vector_store %arg7[%c0_10, %c68], %8 {strides = array<i32>} : memref<18x72xf32, #tpu.memory_space<vmem>>, vector<18x4xf32>,
    %c1 = arith.constant 1 : index
    %c4 = arith.constant 4 : index
    %10 = vector.load %arg7[%c1, %c4] : memref<18x72xf32, #tpu.memory_space<vmem>>, vector<16x64xf32>
    tpu.vector_store %arg7[%c1, %c4], %1 {strides = array<i32>} : memref<18x72xf32, #tpu.memory_space<vmem>>, vector<16x64xf32>,
    %cst_11 = arith.constant 0.000000e+00 : f32
    %11 = vector.broadcast %cst_11 : f32 to vector<16x128xf32>
    %c0_12 = arith.constant 0 : index
    %c0_13 = arith.constant 0 : index
    %12 = vector.load %arg7[%c0_12, %c0_13] : memref<18x72xf32, #tpu.memory_space<vmem>>, vector<16x72xf32>
    %c0_14 = arith.constant 0 : index
    %c0_15 = arith.constant 0 : index
    %c0_16 = arith.constant 0 : index
    %13 = vector.load %arg2[%c0_14, %c0_15, %c0_16] : memref<3x72x128xf32, #tpu.memory_space<vmem>>, vector<1x72x128xf32>
    %14 = vector.shape_cast %13 : vector<1x72x128xf32> to vector<72x128xf32>
    %cst_17 = arith.constant dense<0.000000e+00> : vector<16x128xf32>
    %15 = tpu.matmul %12, %14, %cst_17 {dimension_numbers = #tpu.dot_dimension_numbers<[1], [0], [0], [1], [0, 0, 1, 1], [], []>} : vector<16x72xf32>, vector<72x128xf32>, vector<16x128xf32> -> vector<16x128xf32>
    %16 = arith.addf %11, %15 : vector<16x128xf32>
    %c1_18 = arith.constant 1 : index
    %c0_19 = arith.constant 0 : index
    %17 = vector.load %arg7[%c1_18, %c0_19] : memref<18x72xf32, #tpu.memory_space<vmem>>, vector<16x72xf32>
    %c1_20 = arith.constant 1 : index
    %c0_21 = arith.constant 0 : index
    %c0_22 = arith.constant 0 : index
    %18 = vector.load %arg2[%c1_20, %c0_21, %c0_22] : memref<3x72x128xf32, #tpu.memory_space<vmem>>, vector<1x72x128xf32>
    %19 = vector.shape_cast %18 : vector<1x72x128xf32> to vector<72x128xf32>
    %cst_23 = arith.constant dense<0.000000e+00> : vector<16x128xf32>
    %20 = tpu.matmul %17, %19, %cst_23 {dimension_numbers = #tpu.dot_dimension_numbers<[1], [0], [0], [1], [0, 0, 1, 1], [], []>} : vector<16x72xf32>, vector<72x128xf32>, vector<16x128xf32> -> vector<16x128xf32>
    %21 = arith.addf %16, %20 : vector<16x128xf32>
    %c2 = arith.constant 2 : index
    %c0_24 = arith.constant 0 : index
    %22 = vector.load %arg7[%c2, %c0_24] : memref<18x72xf32, #tpu.memory_space<vmem>>, vector<16x72xf32>
    %c2_25 = arith.constant 2 : index
    %c0_26 = arith.constant 0 : index
    %c0_27 = arith.constant 0 : index
    %23 = vector.load %arg2[%c2_25, %c0_26, %c0_27] : memref<3x72x128xf32, #tpu.memory_space<vmem>>, vector<1x72x128xf32>
    %24 = vector.shape_cast %23 : vector<1x72x128xf32> to vector<72x128xf32>
    %cst_28 = arith.constant dense<0.000000e+00> : vector<16x128xf32>
    %25 = tpu.matmul %22, %24, %cst_28 {dimension_numbers = #tpu.dot_dimension_numbers<[1], [0], [0], [1], [0, 0, 1, 1], [], []>} : vector<16x72xf32>, vector<72x128xf32>, vector<16x128xf32> -> vector<16x128xf32>
    %26 = arith.addf %21, %25 : vector<16x128xf32>
    %c0_29 = arith.constant 0 : index
    %c0_30 = arith.constant 0 : index
    %27 = vector.load %arg3[%c0_29, %c0_30] : memref<1x128xf32, #tpu.memory_space<vmem>>, vector<1x128xf32>
    %28 = vector.broadcast %27 : vector<1x128xf32> to vector<16x128xf32>
    %29 = arith.addf %26, %28 : vector<16x128xf32>
    %cst_31 = arith.constant 0.000000e+00 : f32
    %30 = vector.broadcast %cst_31 : f32 to vector<16x128xf32>
    %31 = arith.maximumf %29, %30 : vector<16x128xf32>
    %cst_32 = arith.constant 0.000000e+00 : f32
    %32 = vector.broadcast %cst_32 : f32 to vector<1x144xf32>
    %c0_33 = arith.constant 0 : index
    %c0_34 = arith.constant 0 : index
    %33 = vector.load %arg8[%c0_33, %c0_34] : memref<18x144xf32, #tpu.memory_space<vmem>>, vector<1x144xf32>
    tpu.vector_store %arg8[%c0_33, %c0_34], %32 {strides = array<i32>} : memref<18x144xf32, #tpu.memory_space<vmem>>, vector<1x144xf32>,
    %cst_35 = arith.constant 0.000000e+00 : f32
    %34 = vector.broadcast %cst_35 : f32 to vector<1x144xf32>
    %c17_36 = arith.constant 17 : index
    %c0_37 = arith.constant 0 : index
    %35 = vector.load %arg8[%c17_36, %c0_37] : memref<18x144xf32, #tpu.memory_space<vmem>>, vector<1x144xf32>
    tpu.vector_store %arg8[%c17_36, %c0_37], %34 {strides = array<i32>} : memref<18x144xf32, #tpu.memory_space<vmem>>, vector<1x144xf32>,
    %cst_38 = arith.constant 0.000000e+00 : f32
    %36 = vector.broadcast %cst_38 : f32 to vector<18x8xf32>
    %c0_39 = arith.constant 0 : index
    %c0_40 = arith.constant 0 : index
    %37 = vector.load %arg8[%c0_39, %c0_40] : memref<18x144xf32, #tpu.memory_space<vmem>>, vector<18x8xf32>
    tpu.vector_store %arg8[%c0_39, %c0_40], %36 {strides = array<i32>} : memref<18x144xf32, #tpu.memory_space<vmem>>, vector<18x8xf32>,
    %cst_41 = arith.constant 0.000000e+00 : f32
    %38 = vector.broadcast %cst_41 : f32 to vector<18x8xf32>
    %c0_42 = arith.constant 0 : index
    %c136 = arith.constant 136 : index
    %39 = vector.load %arg8[%c0_42, %c136] : memref<18x144xf32, #tpu.memory_space<vmem>>, vector<18x8xf32>
    tpu.vector_store %arg8[%c0_42, %c136], %38 {strides = array<i32>} : memref<18x144xf32, #tpu.memory_space<vmem>>, vector<18x8xf32>,
    %c1_43 = arith.constant 1 : index
    %c8 = arith.constant 8 : index
    %40 = vector.load %arg8[%c1_43, %c8] : memref<18x144xf32, #tpu.memory_space<vmem>>, vector<16x128xf32>
    tpu.vector_store %arg8[%c1_43, %c8], %31 {strides = array<i32>} : memref<18x144xf32, #tpu.memory_space<vmem>>, vector<16x128xf32>,
    %cst_44 = arith.constant 0.000000e+00 : f32
    %41 = vector.broadcast %cst_44 : f32 to vector<16x64xf32>
    %c0_45 = arith.constant 0 : index
    %c0_46 = arith.constant 0 : index
    %42 = vector.load %arg8[%c0_45, %c0_46] : memref<18x144xf32, #tpu.memory_space<vmem>>, vector<16x144xf32>
    %c0_47 = arith.constant 0 : index
    %c0_48 = arith.constant 0 : index
    %c0_49 = arith.constant 0 : index
    %43 = vector.load %arg4[%c0_47, %c0_48, %c0_49] : memref<3x144x64xf32, #tpu.memory_space<vmem>>, vector<1x144x64xf32>
    %44 = vector.shape_cast %43 : vector<1x144x64xf32> to vector<144x64xf32>
    %cst_50 = arith.constant dense<0.000000e+00> : vector<16x64xf32>
    %45 = tpu.matmul %42, %44, %cst_50 {dimension_numbers = #tpu.dot_dimension_numbers<[1], [0], [0], [1], [0, 0, 1, 1], [], []>} : vector<16x144xf32>, vector<144x64xf32>, vector<16x64xf32> -> vector<16x64xf32>
    %46 = arith.addf %41, %45 : vector<16x64xf32>
    %c1_51 = arith.constant 1 : index
    %c0_52 = arith.constant 0 : index
    %47 = vector.load %arg8[%c1_51, %c0_52] : memref<18x144xf32, #tpu.memory_space<vmem>>, vector<16x144xf32>
    %c1_53 = arith.constant 1 : index
    %c0_54 = arith.constant 0 : index
    %c0_55 = arith.constant 0 : index
    %48 = vector.load %arg4[%c1_53, %c0_54, %c0_55] : memref<3x144x64xf32, #tpu.memory_space<vmem>>, vector<1x144x64xf32>
    %49 = vector.shape_cast %48 : vector<1x144x64xf32> to vector<144x64xf32>
    %cst_56 = arith.constant dense<0.000000e+00> : vector<16x64xf32>
    %50 = tpu.matmul %47, %49, %cst_56 {dimension_numbers = #tpu.dot_dimension_numbers<[1], [0], [0], [1], [0, 0, 1, 1], [], []>} : vector<16x144xf32>, vector<144x64xf32>, vector<16x64xf32> -> vector<16x64xf32>
    %51 = arith.addf %46, %50 : vector<16x64xf32>
    %c2_57 = arith.constant 2 : index
    %c0_58 = arith.constant 0 : index
    %52 = vector.load %arg8[%c2_57, %c0_58] : memref<18x144xf32, #tpu.memory_space<vmem>>, vector<16x144xf32>
    %c2_59 = arith.constant 2 : index
    %c0_60 = arith.constant 0 : index
    %c0_61 = arith.constant 0 : index
    %53 = vector.load %arg4[%c2_59, %c0_60, %c0_61] : memref<3x144x64xf32, #tpu.memory_space<vmem>>, vector<1x144x64xf32>
    %54 = vector.shape_cast %53 : vector<1x144x64xf32> to vector<144x64xf32>
    %cst_62 = arith.constant dense<0.000000e+00> : vector<16x64xf32>
    %55 = tpu.matmul %52, %54, %cst_62 {dimension_numbers = #tpu.dot_dimension_numbers<[1], [0], [0], [1], [0, 0, 1, 1], [], []>} : vector<16x144xf32>, vector<144x64xf32>, vector<16x64xf32> -> vector<16x64xf32>
    %56 = arith.addf %51, %55 : vector<16x64xf32>
    %c0_63 = arith.constant 0 : index
    %c0_64 = arith.constant 0 : index
    %57 = vector.load %arg5[%c0_63, %c0_64] : memref<1x64xf32, #tpu.memory_space<vmem>>, vector<1x64xf32>
    %58 = vector.broadcast %57 : vector<1x64xf32> to vector<16x64xf32>
    %59 = arith.addf %56, %58 : vector<16x64xf32>
    %cst_65 = arith.constant 0.000000e+00 : f32
    %60 = vector.broadcast %cst_65 : f32 to vector<16x64xf32>
    %61 = arith.maximumf %59, %60 : vector<16x64xf32>
    %62 = arith.addf %61, %1 : vector<16x64xf32>
    %c0_66 = arith.constant 0 : index
    %c0_67 = arith.constant 0 : index
    %c0_68 = arith.constant 0 : index
    %63 = vector.load %arg6[%c0_66, %c0_67, %c0_68] : memref<1x16x64xf32, #tpu.memory_space<vmem>>, vector<1x16x64xf32>
    %64 = vector.shape_cast %63 : vector<1x16x64xf32> to vector<16x64xf32>
    %65 = vector.shape_cast %62 : vector<16x64xf32> to vector<1x16x64xf32>
    tpu.vector_store %arg6[%c0_66, %c0_67, %c0_68], %65 {strides = array<i32>} : memref<1x16x64xf32, #tpu.memory_space<vmem>>, vector<1x16x64xf32>,
    return
  }
  func.func @transform_0(%arg0: i32) -> (i32, i32, i32) {
    %c0_i32 = arith.constant 0 : i32
    %c0_i32_0 = arith.constant 0 : i32
    %c0_i32_1 = arith.constant 0 : i32
    return %arg0, %c0_i32, %c0_i32_0 : i32, i32, i32
  }
  func.func @transform_1(%arg0: i32) -> (i32, i32, i32) {
    %c0_i32 = arith.constant 0 : i32
    %c0_i32_0 = arith.constant 0 : i32
    %c0_i32_1 = arith.constant 0 : i32
    %c0_i32_2 = arith.constant 0 : i32
    return %c0_i32, %c0_i32_0, %c0_i32_1 : i32, i32, i32
  }
  func.func @transform_2(%arg0: i32) -> (i32, i32) {
    %c0_i32 = arith.constant 0 : i32
    %c0_i32_0 = arith.constant 0 : i32
    %c0_i32_1 = arith.constant 0 : i32
    return %c0_i32, %c0_i32_0 : i32, i32
  }
  func.func @transform_3(%arg0: i32) -> (i32, i32, i32) {
    %c0_i32 = arith.constant 0 : i32
    %c0_i32_0 = arith.constant 0 : i32
    %c0_i32_1 = arith.constant 0 : i32
    %c0_i32_2 = arith.constant 0 : i32
    return %c0_i32, %c0_i32_0, %c0_i32_1 : i32, i32, i32
  }
  func.func @transform_4(%arg0: i32) -> (i32, i32) {
    %c0_i32 = arith.constant 0 : i32
    %c0_i32_0 = arith.constant 0 : i32
    %c0_i32_1 = arith.constant 0 : i32
    return %c0_i32, %c0_i32_0 : i32, i32
  }
  func.func @transform_5(%arg0: i32) -> (i32, i32, i32) {
    %c0_i32 = arith.constant 0 : i32
    %c0_i32_0 = arith.constant 0 : i32
    %c0_i32_1 = arith.constant 0 : i32
    return %arg0, %c0_i32, %c0_i32_0 : i32, i32, i32
  }
}

</mosaic_0001>

<bundles_post_ra>
// kernel: tpu_custom_call.1
= control target key start
LH: loop header
LB: loop body
LE: loop exit
PB: predicated region body
PF: predicated region fallthrough
CT: control target
= control target key end

     0   :  { %10 = vsyncpa [#allocation5], 0  ;;  %s1920_s0 = inlined_call_operand.vmem [shape: f32[2,16,64], index: 0, kind: input, shape index: {}]   ;;  %s1921_s1 = inlined_call_operand.vmem [shape: f32[3,72,128], index: 1, kind: input, shape index: {}]   ;;  %s1922_s2 = inlined_call_operand.vmem [shape: f32[1,128], index: 2, kind: input, shape index: {}]   ;;  %s1923_s3 = inlined_call_operand.vmem [shape: f32[3,144,64], index: 3, kind: input, shape index: {}]   ;;  %s1924_s4 = inlined_call_operand.vmem [shape: f32[1,64], index: 4, kind: input, shape index: {}]   ;;  %s1925_s5 = inlined_call_operand.hbm [shape: f32[2,16,64], index: 5, kind: output, shape index: {}]  }
   0x1   :  { %12 = vsyncpa [#allocation5 + $0x1], 0  ;;  %s1478_s18 = smov 0   ;;  %s1480_s19 = smov 0  }
   0x2   :  { %s1482_s20 = smov 0   ;;  %s1484_s21 = smov 0  }
   0x3 LB: > { %s1499_s22 = sadd.s32 4294967295, %s1440_s21   ;;  %s1023_s23 = sadd.s32 4294967294, %s1440_s21   ;;  %s1440_s21 = sphi %s1484_s21, %s1931_s21   ;;  %s1436_s20 = sphi %s1482_s20, %s1930_s20   ;;  %s1432_s19 = sphi %s1480_s19, %s1929_s19   ;;  %s1428_s18 = sphi %s1478_s18, %s1928_s18  }
   0x4   : > { %s1503_s24 = sadd.s32 1, %s1440_s21   ;;  %s135_s25 = sadd.s32 1, %s1436_s20 }
   0x5   : > { %s132_s26 = ssub.s32 %s1440_s21, %s1503_s24  ;;  %p145_p0 = scmp.ne.s32.totalorder %s1436_s20, %s1432_s19 }
   0x6   : > { %p133_p1 = scmp.eq.s32.totalorder %s132_s26, 0  ;;  %p146_p2 = scmp.eq.s32.totalorder %s1499_s22, 1 }
   0x7   : > { %p151_p3 = scmp.ne.s32.totalorder %s1432_s19, %s1428_s18  ;;  %p152_p4 = scmp.eq.s32.totalorder %s1023_s23, 1 }
   0x8   : > { %s1514_s27 = scalar_select %p133_p1, %s1436_s20, %s135_s25  }
   0x9   : > { %p1516_p5 = por %p146_p2, %p145_p0  ;;  %p1520_p6 = por %p152_p4, %p151_p3 }
   0xa   : > { %p1026_p7 = scmp.ge.s32.totalorder %s1440_s21, 1  ;;  %p190_p8 = scmp.lt.s32.totalorder %s1440_s21, 3 }
   0xc   : > { %p191_p9 = pnand %p1026_p7, %p190_p8 }
   0xd   : > { %p218_p10 = scmp.lt.s32.totalorder (!%p191_p9), %s1499_s22, 1  ;;  %v1030_v0 = vld [vmem:[%s1921_s1 + $0x48] sm:$0xff] (!%p191_p9)  ;;  %v1031_v1 = vld [vmem:[%s1921_s1 + $0x50] sm:$0xff] (!%p191_p9)  ;;  %v1032_v2 = vld [vmem:[%s1921_s1 + $0x58] sm:$0xff] (!%p191_p9)  ;;  %vm225_vm0 = vcmask (!%p191_p9), 581632   ;;  %vm228_vm1 = vcmask (!%p191_p9), 31744   ;;  %v541_v53 = vlaneseq (!%p191_p9) }
   0xe   : > { %194 = sbr.rel (%p191_p9) target bundleno = 817 (0x331), region = 40  ;;  %v1201_v3 = vpack.c.bf16 (!%p191_p9), %v1031_v1, %v1030_v0  ;;  %v1033_v4 = vld [vmem:[%s1921_s1 + $0x60] sm:$0xff] (!%p191_p9)  ;;  %vm233_vm2 = vcmask (!%p191_p9), 589344   ;;  %v1442_v6 = vmov (!%p191_p9), 0.0   ;;  %v1034_v7 = vld [vmem:[%s1921_s1 + $0x68] sm:$0xff] (!%p191_p9)  ;;  %v1035_v8 = vld [vmem:[%s1921_s1 + $0x70] sm:$0xff] (!%p191_p9) }
   0xf   : > { %v1205_v5 = vpack.c.bf16 (!%p191_p9), %v1033_v4, %v1032_v2  ;;  %226 = vst.msk [vmem:[#allocation2] sm:$0x1] (!%p191_p9), %vm225_vm0, %v1442_v6  ;;  %227 = vst.msk [vmem:[#allocation2 + $0x11] sm:$0x1] (!%p191_p9), %vm225_vm0, %v1442_v6  ;;  %vm231_vm3 = vcmask (!%p191_p9), 25600   ;;  %vm236_vm4 = vcmask (!%p191_p9), 583200   ;;  %v1209_v9 = vpack.c.bf16 (!%p191_p9), %v1035_v8, %v1034_v7 }
  0x10   : > { %230 = vst.msk [vmem:[#allocation2 + $0x8] sm:$0xff] (!%p191_p9), %vm228_vm1, %v1442_v6  ;;  %1202 = vmatprep.subr.bf16.mxu0 (!%p191_p9), %v1201_v3  ;;  %229 = vst.msk [vmem:[#allocation2] sm:$0xff] (!%p191_p9), %vm228_vm1, %v1442_v6  ;;  %v1036_v11 = vld [vmem:[%s1921_s1 + $0x78] sm:$0xff] (!%p191_p9)  ;;  %v1037_v12 = vld [vmem:[%s1921_s1 + $0x80] sm:$0xff] (!%p191_p9)  ;;  %s1443_s10 = smov (!%p191_p9), 4   ;;  %vm246_vm5 = vcmask (!%p191_p9), 556064  }
  0x11   : > { %235 = vst.msk [vmem:[#allocation2 + $0x8] sm:$0xff] (!%p191_p9), %vm233_vm2, %v1442_v6  ;;  %1204 = vmatpush3.bf16.msra.mxu0 (!%p191_p9), %v1201_v3  ;;  %234 = vst.msk [vmem:[#allocation2] sm:$0xff] (!%p191_p9), %vm233_vm2, %v1442_v6  ;;  %v1213_v14 = vpack.c.bf16 (!%p191_p9), %v1037_v12, %v1036_v11  ;;  %v1038_v15 = vld [vmem:[%s1921_s1 + $0x88] sm:$0xff] (!%p191_p9)  ;;  %v251_v16 = vld [vmem:[%s1921_s1] sm:$0xff] (!%p191_p9)  ;;  %vm272_vm6 = vcmask (!%p191_p9), 588800   ;;  %v1444_v54 = vmov (!%p191_p9), 0.0|0.0  }
  0x12   : > { %232 = vst.msk [vmem:[#allocation2 + $0x10] sm:$0x3] (!%p191_p9), %vm231_vm3, %v1442_v6  ;;  %1206 = vmatprep.subr.bf16.mxu0 (!%p191_p9), %v1205_v5  ;;  %v252_v17 = vld [vmem:[%s1921_s1 + $0x8] sm:$0xff] (!%p191_p9)  ;;  %v253_v22 = vld [vmem:[%s1921_s1 + $0x10] sm:$0xff] (!%p191_p9)  ;;  %v254_v23 = vld [vmem:[%s1921_s1 + $0x18] sm:$0xff] (!%p191_p9)  ;;  %1249 = vmatprep.subr.bf16.mxu1 (!%p191_p9), %v1444_v54  ;;  %vm553_vm7 = vcmask (!%p191_p9), 58368  }
  0x13   : > { %237 = vst.msk [vmem:[#allocation2 + $0x10] sm:$0x3] (!%p191_p9), %vm236_vm4, %v1442_v6  ;;  %v1217_v18 = vpack.c.bf16 (!%p191_p9), %v252_v17, %v251_v16  ;;  %v1221_v24 = vpack.c.bf16 (!%p191_p9), %v254_v23, %v253_v22  ;;  %v255_v26 = vld [vmem:[%s1921_s1 + $0x20] sm:$0xff] (!%p191_p9)  ;;  %v256_v27 = vld [vmem:[%s1921_s1 + $0x28] sm:$0xff] (!%p191_p9)  ;;  %v257_v30 = vld [vmem:[%s1921_s1 + $0x30] sm:$0xff] (!%p191_p9)  ;;  %vm558_vm8 = vcmask (!%p191_p9), 123968  }
  0x14   : > { %v1225_v29 = vpack.c.bf16 (!%p191_p9), %v256_v27, %v255_v26  ;;  %v258_v31 = vld [vmem:[%s1921_s1 + $0x38] sm:$0xff] (!%p191_p9)  ;;  %v259_v33 = vld [vmem:[%s1921_s1 + $0x40] sm:$0xff] (!%p191_p9)  ;;  %v1043_v34 = vld [vmem:[%s1921_s1 + $0x90] sm:$0xff] (!%p191_p9)  ;;  %vm543_vm9 = vcmp.lt.s32.totalorder (!%p191_p9), %v541_v53, 144  ;;  %vm550_vm10 = vcmask (!%p191_p9), 64512   ;;  %vm555_vm11 = vcmask (!%p191_p9), 130112  }
  0x15   : > { %s219_s13 = scalar_select %p218_p10, %s1499_s22, 1  ;;  %1208 = vmatpush3.bf16.msra.mxu0 %v1205_v5  ;;  %v1229_v32 = vpack.c.bf16 %v258_v31, %v257_v30  ;;  %v1044_v35 = vld [vmem:[%s1921_s1 + $0x98] sm:$0xff]  ;;  %v1045_v36 = vld [vmem:[%s1921_s1 + $0xa0] sm:$0xff]  ;;  %v1046_v37 = vld [vmem:[%s1921_s1 + $0xa8] sm:$0xff]  ;;  %552 = vst.msk [vmem:[#allocation3 + $0x10] sm:$0xff] %vm550_vm10, %v1442_v6  ;;  %vm562_vm12 = vcmask 1040384  }
  0x16   : > { %1210 = vmatprep.subr.bf16.mxu0 %v1209_v9  ;;  %v1233_v38 = vpack.c.bf16 %v1044_v35, %v1043_v34  ;;  %v1237_v39 = vpack.c.bf16 %v1046_v37, %v1045_v36  ;;  %v1047_v41 = vld [vmem:[%s1921_s1 + $0xb0] sm:$0xff]  ;;  %v1048_v42 = vld [vmem:[%s1921_s1 + $0xb8] sm:$0xff]  ;;  %v1049_v45 = vld [vmem:[%s1921_s1 + $0xc0] sm:$0xff]  ;;  %548 = vst.msk [vmem:[#allocation3 + $0x21] ss:$8 sm:$0x3] %vm543_vm9, %v1442_v6 }
  0x17   : > { %s1103_s23 = sshll.u32 %s219_s13, 4  ;;  %v1241_v44 = vpack.c.bf16 %v1048_v42, %v1047_v41  ;;  %v1050_v46 = vld [vmem:[%s1921_s1 + $0xc8] sm:$0xff]  ;;  %v1051_v48 = vld [vmem:[%s1921_s1 + $0xd0] sm:$0xff]  ;;  %v1056_v51 = vld [vmem:[%s1923_s3 + $0x98] sm:$0xff]  ;;  %554 = vst.msk [vmem:[#allocation3 + $0x20] sm:$0x3] %vm553_vm7, %v1442_v6 }
  0x18   : > { %s222_s30 = scalar_lea.vmem %s1920_s0, %s1103_s23  ;;  %v1245_v47 = vpack.c.bf16 %v1050_v46, %v1049_v45  ;;  %v1055_v50 = vld [vmem:[%s1923_s3 + $0x90] sm:$0xff]  ;;  %v1077_v52 = vld [vmem:[%s1923_s3 + $0x120] sm:$0xff]  ;;  %v1078_v56 = vld [vmem:[%s1923_s3 + $0x128] sm:$0xff]  ;;  %545 = vst.msk [vmem:[#allocation3] ss:$8 sm:$0x3] %vm543_vm9, %v1442_v6 }
  0x19   : > { %v1559_v10 = vld [vmem:[%s222_s30] sm:$0xff]  ;;  %v1568_v13 = vld [vmem:[%s222_s30 + $0x8] sm:$0xff]  ;;  %1212 = vmatpush3.bf16.msra.mxu0 %v1209_v9  ;;  %v1250_v55 = vpack.c.bf16 %v1056_v51, %v1055_v50  ;;  %v1304_v59 = vpack.c.bf16 %v1078_v56, %v1077_v52  ;;  %v1079_v60 = vld [vmem:[%s1923_s3 + $0x130] sm:$0xff]  ;;  %559 = vst.msk [vmem:[#allocation3 + $0x28] sm:$0x3] %vm558_vm8, %v1442_v6  ;;  %s1445_s11 = smov 8  }
  0x1a   : > { %240 = vrot.lane.b32.xlu0 %v1559_v10, %s1443_s10  ;;  %1214 = vmatprep.subr.bf16.mxu0 %v1213_v14  ;;  %v1057_v57 = vld [vmem:[%s1923_s3 + $0xa0] sm:$0xff]  ;;  %v1058_v58 = vld [vmem:[%s1923_s3 + $0xa8] sm:$0xff]  ;;  %v1080_v61 = vld [vmem:[%s1923_s3 + $0x138] sm:$0xff]  ;;  %551 = vst.msk [vmem:[#allocation3] sm:$0xff] %vm550_vm10, %v1442_v6  ;;  %vm582_vm13 = vcmask 1040448   ;;  %vm584_vm14 = vcmask 57344  }
  0x1b   : > { %1251 = vmatpush1.bf16.msra.mxu1 %v1250_v55  ;;  %v1253_v62 = vpack.c.bf16 %v1058_v58, %v1057_v57  ;;  %v1307_v63 = vpack.c.bf16 %v1080_v61, %v1079_v60  ;;  %v1059_v0 = vld [vmem:[%s1923_s3 + $0xb0] sm:$0xff]  ;;  %v1060_v1 = vld [vmem:[%s1923_s3 + $0xb8] sm:$0xff]  ;;  %v1081_v2 = vld [vmem:[%s1923_s3 + $0x140] sm:$0xff]  ;;  %556 = vst.msk [vmem:[#allocation3 + $0x8] sm:$0xff] %vm555_vm11, %v1442_v6  ;;  %vm575_vm15 = vcmask 1047617   ;;  %vm577_vm0 = vcmask 64513  }
  0x1c   : > { %1252 = vmatprep.subr.bf16.mxu1 %v1444_v54  ;;  %v1082_v3 = vld [vmem:[%s1923_s3 + $0x148] sm:$0xff]  ;;  %v1256_v4 = vpack.c.bf16 %v1060_v1, %v1059_v0  ;;  %v1061_v7 = vld [vmem:[%s1923_s3 + $0xc0] sm:$0xff]  ;;  %v1083_v9 = vld [vmem:[%s1923_s3 + $0x150] sm:$0xff]  ;;  %557 = vst.msk [vmem:[#allocation3 + $0x18] sm:$0xff] %vm555_vm11, %v1442_v6  ;;  %vm579_vm1 = vcmask 1047616   ;;  %vm637_vm2 = vcmask 1046528  }
  0x1d   : > { %1216 = vmatpush3.bf16.msra.mxu0 %v1213_v14  ;;  %v1310_v5 = vpack.c.bf16 %v1082_v3, %v1081_v2  ;;  %v1062_v8 = vld [vmem:[%s1923_s3 + $0xc8] sm:$0xff]  ;;  %v1084_v11 = vld [vmem:[%s1923_s3 + $0x158] sm:$0xff]  ;;  %v1085_v17 = vld [vmem:[%s1923_s3 + $0x160] sm:$0xff]  ;;  %vm650_vm3 = vcmask 130048   ;;  %vm837_vm4 = vcmask 1045504   ;;  %s215_s23 = sand.u32 1, %s1432_s19  }
  0x1e   : > { %242 = vrot.lane.b32.xlu0 %v1568_v13, %s1443_s10  ;;  %1154 = vmatprep.subr.mxu0 %v1038_v15  ;;  %v1259_v12 = vpack.c.bf16 %v1062_v8, %v1061_v7  ;;  %v1313_v14 = vpack.c.bf16 %v1084_v11, %v1083_v9  ;;  %v1064_v16 = vld [vmem:[%s1923_s3 + $0xd8] sm:$0xff]  ;;  %v1066_v22 = vld [vmem:[%s1923_s3 + $0xe8] sm:$0xff]  ;;  %v1067_v27 = vld [vmem:[%s1923_s3 + $0xf0] sm:$0xff]  ;;  %s1027_s30 = sshll.u32 %s215_s23, 4  ;;  %s1104_s6 = sshll.u32 %s1499_s22, 8 }
  0x1f   : > { %1254 = vmatpush1.bf16.msra.mxu1 %v1253_v62  ;;  %v1089_v6 = vld [vmem:[%s1923_s3 + $0x180] sm:$0xff]  ;;  %v1090_v30 = vld [vmem:[%s1923_s3 + $0x188] sm:$0xff]  ;;  %v1091_v35 = vld [vmem:[%s1923_s3 + $0x190] sm:$0xff]  ;;  %s217_s7 = scalar_lea.vmem [#allocation4], %s1027_s30  ;;  %s1873_s12 = scalar_lea.hbm %s1925_s5, %s1104_s6 }
  0x20   : > { %1255 = vmatprep.subr.bf16.mxu1 %v1444_v54  ;;  %v1054_v31 = vld [vmem:[%s1922_s2] ss:$0 sm:$0xff]  ;;  %v1070_v34 = vld [vmem:[%s1923_s3 + $0x108] sm:$0xff]  ;;  %s961_s8 = sshll.u32 %s217_s7, 4  ;;  %s1878_s13 = scalar_lea.sflag [#allocation5], %s215_s23  ;;  %s1876_s8 = int_to_ptr.vmem [resolvable:$true] %s961_s8 }
  0x21   : > { %1155 = vmatpush3.msra.mxu0 %v1038_v15  ;;  %v1063_v15 = vld [vmem:[%s1923_s3 + $0xd0] sm:$0xff]  ;;  %v1094_v45 = vld [vmem:[%s1923_s3 + $0x1a8] sm:$0xff]  ;;  %v590_v62 = vld [vmem:[%s1923_s3] sm:$0xff]  ;;  %s1378_s22 = scalar_lea.vmem %s1876_s8, 256  ;;  %s1446_s14 = smov [#allocation4]  }
  0x22   : > { %1218 = vmatprep.subr.bf16.mxu0 %v1217_v18  ;;  %p1379_p11 = scmp.ne.s32.totalorder %s1876_s8, %s1378_s22  ;;  %s1382_s15 = sshll.u32 %s1446_s14, 4  ;;  %s1383_s15 = int_to_ptr.vmem [resolvable:$false] %s1382_s15 }
  0x23   : > { %1257 = vmatpush1.bf16.msra.mxu1 %v1256_v4  ;;  %s1384_s16 = scalar_lea.vmem %s1383_s15, 512  ;;  %p1385_p0 = scmp.lt.s32.totalorder %s1876_s8, %s1383_s15 }
  0x24   : > { %1258 = vmatprep.subr.bf16.mxu1 %v1444_v54  ;;  %p1380_p12 = pnand %p1379_p11, %p1516_p5  ;;  %p1386_p1 = scmp.lt.s32.totalorder %s1384_s16, %s1378_s22 }
  0x26   : > { %p1381_p13 = pneg %p1380_p12  ;;  %p1387_p2 = por %p1386_p1, %p1385_p0 }
  0x27   : > { %1260 = vmatpush1.bf16.msra.mxu1 %v1259_v12 }
  0x28   : > { %1261 = vmatprep.subr.bf16.mxu1 %v1444_v54  ;;  %p1388_p3 = pnand %p1387_p2, %p1381_p13 }
  0x8c   : > { %v241_v19 = vpop.permute.xlu0 %240 }
  0x8d   : > { %247 = vst.msk [vmem:[#allocation2 + $0x1] sm:$0xff] %vm246_vm5, %v241_v19  ;;  %v1262_v19 = vpack.c.bf16 %v1064_v16, %v1063_v15 }
  0x8f   : > { %1263 = vmatpush1.bf16.msra.mxu1 %v1262_v19 }
  0x90   : > { %v243_v20 = vpop.permute.xlu0 %242  ;;  %1264 = vmatprep.subr.bf16.mxu1 %v1444_v54 }
  0x91   : > { %248 = vst.msk [vmem:[#allocation2 + $0x9] sm:$0xff] %vm246_vm5, %v243_v20  ;;  %vm944_vm5 = vcmask 523264  }
  0x94   : > { %v260_v21 = vld [vmem:[#allocation2 + $0x1] sm:$0xff] }
  0x95   : > { %1156 = vmatprep.mubr.msk.f32.mxu0 %vm272_vm6, %v260_v21  ;;  %v249_v28 = vld [vmem:[#allocation2] sm:$0xff] }
  0x96   : > { %v1065_v21 = vld [vmem:[%s1923_s3 + $0xe0] sm:$0xff] }
  0x97   : > { %v1265_v23 = vpack.c.bf16 %v1066_v22, %v1065_v21 }
  0x98   : > { %v261_v25 = vld [vmem:[#allocation2 + $0x9] sm:$0xff] }
  0x99   : > { %1157 = vmatmul.mubr.msk.f32.vlgmr.msra.gmra.mrb[0].mxu0 %vm272_vm6, %v261_v25  ;;  %v250_v40 = vld [vmem:[#allocation2 + $0x8] sm:$0xff]  ;;  %v1088_v25 = vld [vmem:[%s1923_s3 + $0x178] sm:$0xff]  ;;  %1266 = vmatpush1.bf16.msra.mxu1 %v1265_v23 }
  0x9a   : > { %1220 = vmatpush3.bf16.msra.mxu0 %v1217_v18  ;;  %1177 = vmatprep.mubr.msk.f32.mxu0 %vm272_vm6, %v249_v28  ;;  %v435_v43 = vld [vmem:[#allocation2 + $0x2] sm:$0xff]  ;;  %v436_v49 = vld [vmem:[#allocation2 + $0xa] sm:$0xff]  ;;  %v1068_v28 = vld [vmem:[%s1923_s3 + $0xf8] sm:$0xff] }
  0x9b   : > { %1222 = vmatprep.subr.bf16.mxu0 %v1221_v24  ;;  %v1086_v18 = vld [vmem:[%s1923_s3 + $0x168] sm:$0xff]  ;;  %1267 = vmatprep.subr.bf16.mxu1 %v1444_v54  ;;  %v593_v23 = vld [vmem:[%s1923_s3 + $0x18] sm:$0xff] }
  0x9c   : > { %v1316_v20 = vpack.c.bf16 %v1086_v18, %v1085_v17  ;;  %v592_v17 = vld [vmem:[%s1923_s3 + $0x10] sm:$0xff] }
  0x9e   : > { %1224 = vmatpush3.bf16.msra.mxu0 %v1221_v24  ;;  %v1087_v24 = vld [vmem:[%s1923_s3 + $0x170] sm:$0xff] }
  0x9f   : > { %1226 = vmatprep.subr.bf16.mxu0 %v1225_v29  ;;  %v1319_v26 = vpack.c.bf16 %v1088_v25, %v1087_v24 }
  0xa2   : > { %1228 = vmatpush3.bf16.msra.mxu0 %v1225_v29  ;;  %v1268_v29 = vpack.c.bf16 %v1068_v28, %v1067_v27 }
  0xa3   : > { %1230 = vmatprep.subr.bf16.mxu0 %v1229_v32 }
  0xa4   : > { %1269 = vmatpush1.bf16.msra.mxu1 %v1268_v29  ;;  %v1280_v29 = vpack.c.bf16 %v593_v23, %v592_v17 }
  0xa5   : > { %1270 = vmatprep.subr.bf16.mxu1 %v1444_v54 }
  0xa6   : > { %1232 = vmatpush3.bf16.msra.mxu0 %v1229_v32  ;;  %v1322_v32 = vpack.c.bf16 %v1090_v30, %v1089_v6  ;;  %v594_v30 = vld [vmem:[%s1923_s3 + $0x20] sm:$0xff] }
  0xa7   : > { %1175 = vmatprep.subr.mxu0 %v259_v33 }
  0xaa   : > { %1176 = vmatpush3.msra.mxu0 %v259_v33  ;;  %v1069_v33 = vld [vmem:[%s1923_s3 + $0x100] sm:$0xff] }
  0xab   : > { %1178 = vmatmul.mubr.msk.f32.vlgmr.msra.gmra.mrb[0].mxu0 %vm272_vm6, %v250_v40  ;;  %1234 = vmatprep.subr.bf16.mxu0 %v1233_v38  ;;  %v1271_v37 = vpack.c.bf16 %v1070_v34, %v1069_v33  ;;  %v1072_v40 = vld [vmem:[%s1923_s3 + $0x118] sm:$0xff] }
  0xac   : > { %1236 = vmatpush3.bf16.msra.mxu0 %v1233_v38  ;;  %1198 = vmatprep.mubr.msk.f32.mxu0 %vm272_vm6, %v435_v43  ;;  %v1092_v38 = vld [vmem:[%s1923_s3 + $0x198] sm:$0xff] }
  0xad   : > { %1238 = vmatprep.subr.bf16.mxu0 %v1237_v39  ;;  %v1325_v43 = vpack.c.bf16 %v1092_v38, %v1091_v35  ;;  %1272 = vmatpush1.bf16.msra.mxu1 %v1271_v37  ;;  %v597_v37 = vld [vmem:[%s1923_s3 + $0x38] sm:$0xff] }
  0xae   : > { %1273 = vmatprep.subr.bf16.mxu1 %v1444_v54 }
  0xb0   : > { %1240 = vmatpush3.bf16.msra.mxu0 %v1237_v39  ;;  %v1071_v39 = vld [vmem:[%s1923_s3 + $0x110] sm:$0xff] }
  0xb1   : > { %1242 = vmatprep.subr.bf16.mxu0 %v1241_v44 }
  0xb4   : > { %1244 = vmatpush3.bf16.msra.mxu0 %v1241_v44  ;;  %v1093_v44 = vld [vmem:[%s1923_s3 + $0x1a0] sm:$0xff] }
  0xb5   : > { %1246 = vmatprep.subr.bf16.mxu0 %v1245_v47  ;;  %v1328_v50 = vpack.c.bf16 %v1094_v45, %v1093_v44  ;;  %v602_v45 = vld [vmem:[%s1923_s3 + $0x60] sm:$0xff] }
  0xb8   : > { %1248 = vmatpush3.bf16.msra.mxu0 %v1245_v47 }
  0xb9   : > { %1196 = vmatprep.subr.mxu0 %v1051_v48 }
  0xbc   : > { %1197 = vmatpush3.msra.mxu0 %v1051_v48  ;;  %v1274_v48 = vpack.c.bf16 %v1072_v40, %v1071_v39  ;;  %v598_v39 = vld [vmem:[%s1923_s3 + $0x40] sm:$0xff]  ;;  %v599_v40 = vld [vmem:[%s1923_s3 + $0x48] sm:$0xff] }
  0xbd   : > { %1199 = vmatmul.mubr.msk.f32.vlgmr.msra.gmra.mrb[0].mxu0 %vm272_vm6, %v436_v49  ;;  %1303 = vmatprep.subr.bf16.mxu0 %v1444_v54 }
  0xbe   : > { %1305 = vmatpush1.bf16.msra.mxu0 %v1304_v59  ;;  %1275 = vmatpush1.bf16.msra.mxu1 %v1274_v48  ;;  %v604_v48 = vld [vmem:[%s1923_s3 + $0x70] sm:$0xff] }
  0xbf   : > { %1306 = vmatprep.subr.bf16.mxu0 %v1444_v54  ;;  %1276 = vmatprep.subr.bf16.mxu1 %v1444_v54 }
  0xc2   : > { %1308 = vmatpush1.bf16.msra.mxu0 %v1307_v63  ;;  %v591_v63 = vld [vmem:[%s1923_s3 + $0x8] sm:$0xff] }
  0xc3   : > { %1309 = vmatprep.subr.bf16.mxu0 %v1444_v54  ;;  %v1277_v15 = vpack.c.bf16 %v591_v63, %v590_v62 }
  0xc6   : > { %1311 = vmatpush1.bf16.msra.mxu0 %v1310_v5 }
  0xc7   : > { %1312 = vmatprep.subr.bf16.mxu0 %v1444_v54 }
  0xca   : > { %1314 = vmatpush1.bf16.msra.mxu0 %v1313_v14 }
  0xcb   : > { %1315 = vmatprep.subr.bf16.mxu0 %v1444_v54 }
  0xce   : > { %1317 = vmatpush1.bf16.msra.mxu0 %v1316_v20 }
  0xcf   : > { %1318 = vmatprep.subr.bf16.mxu0 %v1444_v54 }
  0xd2   : > { %1320 = vmatpush1.bf16.msra.mxu0 %v1319_v26 }
  0xd3   : > { %1321 = vmatprep.subr.bf16.mxu0 %v1444_v54 }
  0xd6   : > { %1323 = vmatpush1.bf16.msra.mxu0 %v1322_v32 }
  0xd7   : > { %1324 = vmatprep.subr.bf16.mxu0 %v1444_v54 }
  0xda   : > { %1326 = vmatpush1.bf16.msra.mxu0 %v1325_v43  ;;  %v601_v43 = vld [vmem:[%s1923_s3 + $0x58] sm:$0xff] }
  0xdb   : > { %1327 = vmatprep.subr.bf16.mxu0 %v1444_v54 }
  0xde   : > { %1329 = vmatpush1.bf16.msra.mxu0 %v1328_v50 }
 0x190   : > { %v1200_v36 = vpop.f32.mrb[0].mxu0 }
 0x191   : > { %v538_v41 = vadd.f32 %v1200_v36, %v1054_v31  ;;  %v519_v42 = vpop.f32.mrb[1].mxu0  ;;  %v596_v36 = vld [vmem:[%s1923_s3 + $0x30] sm:$0xff] }
 0x192   : > { %v537_v46 = vadd.f32 %v1054_v31, %v519_v42  ;;  %v595_v31 = vld [vmem:[%s1923_s3 + $0x28] sm:$0xff]  ;;  %v1286_v38 = vpack.c.bf16 %v597_v37, %v596_v36  ;;  %v600_v42 = vld [vmem:[%s1923_s3 + $0x50] sm:$0xff] }
 0x193   : > { %v540_v47 = vmax.f32 %v538_v41, 0.0  ;;  %v1283_v35 = vpack.c.bf16 %v595_v31, %v594_v30  ;;  %v1289_v41 = vpack.c.bf16 %v599_v40, %v598_v39  ;;  %v1292_v44 = vpack.c.bf16 %v601_v43, %v600_v42 }
 0x194   : > { %v539_v49 = vmax.f32 %v537_v46, 0.0  ;;  %v603_v46 = vld [vmem:[%s1923_s3 + $0x68] sm:$0xff] }
 0x195   : > { %v564_v51 = vrot.slane %v540_v47, 7  ;;  %v1295_v47 = vpack.c.bf16 %v603_v46, %v602_v45 }
 0x196   : > { %v563_v52 = vrot.slane %v539_v49, 7  ;;  %v605_v49 = vld [vmem:[%s1923_s3 + $0x78] sm:$0xff] }
 0x197   : > { %570 = vrot.lane.b32.xlu0 %v564_v51, %s1445_s11  ;;  %v1298_v50 = vpack.c.bf16 %v605_v49, %v604_v48 }
 0x198   : > { %566 = vrot.lane.b32.xlu1 %v563_v52, %s1445_s11  ;;  %v565_v53 = vsel %vm562_vm12, %v563_v52, %v564_v51  ;;  %v606_v51 = vld [vmem:[%s1923_s3 + $0x80] sm:$0xff]  ;;  %v607_v52 = vld [vmem:[%s1923_s3 + $0x88] sm:$0xff] }
 0x19c   : > { %568 = vrot.lane.b32.xlu1 %v565_v53, %s1445_s11  ;;  %v1301_v53 = vpack.c.bf16 %v607_v52, %v606_v51 }
 0x209   : > { %v571_v55 = vpop.permute.xlu0 %570 }
 0x20a   : > { %583 = vst.msk [vmem:[#allocation3 + $0x20] sm:$0x1] %vm582_vm13, %v571_v55  ;;  %v567_v56 = vpop.permute.xlu1 %566 }
 0x20b   : > { %585 = vst.msk [vmem:[#allocation3 + $0x28] sm:$0x1] %vm584_vm14, %v571_v55 }
 0x20c   : > { %576 = vst.msk [vmem:[#allocation3] sm:$0xfe] %vm575_vm15, %v567_v56 }
 0x20d   : > { %578 = vst.msk [vmem:[#allocation3 + $0x8] sm:$0xfe] %vm577_vm0, %v567_v56 }
 0x20e   : > { %v569_v57 = vpop.permute.xlu1 %568 }
 0x20f   : > { %580 = vst.msk [vmem:[#allocation3 + $0x10] sm:$0xff] %vm579_vm1, %v569_v57 }
 0x210   : > { %581 = vst.msk [vmem:[#allocation3 + $0x18] sm:$0xff] %vm550_vm10, %v569_v57 }
 0x211   : > { %v610_v22 = vld [vmem:[#allocation3 + $0x20] sm:$0x1] }
 0x212   : > { %v611_v0 = vld [vmem:[#allocation3 + $0x28] sm:$0x1]  ;;  %v812_v24 = vld [vmem:[#allocation3 + $0x20] sm:$0x3]  ;;  %v644_v28 = vrot.slane %v610_v22, 1 }
 0x213   : > { %v608_v60 = vld [vmem:[#allocation3] sm:$0xfe]  ;;  %v813_v14 = vld [vmem:[#allocation3 + $0x28] sm:$0x3]  ;;  %v646_v16 = vrot.slane %v611_v0, 1  ;;  %v844_v6 = vrot.slane %v812_v24, 2 }
 0x214   : > { %v609_v58 = vld [vmem:[#allocation3 + $0x8] sm:$0xfe]  ;;  %v810_v61 = vld [vmem:[#allocation3] sm:$0xfc]  ;;  %v638_v5 = vrot.slane %v608_v60, 1  ;;  %v846_v25 = vrot.slane %v813_v14, 2 }
 0x215   : > { %v811_v59 = vld [vmem:[#allocation3 + $0x8] sm:$0xfc]  ;;  %v641_v2 = vrot.slane %v609_v58, 1  ;;  %v838_v7 = vrot.slane %v810_v61, 2  ;;  %v586_v55 = vld [vmem:[#allocation3] sm:$0xff] }
 0x216   : > { %v841_v3 = vrot.slane %v811_v59, 2  ;;  %v1786_v4 = vld [vmem:[#allocation3 + $0x10] sm:$0xff]  ;;  %v587_v34 = vld [vmem:[#allocation3 + $0x8] sm:$0xff] }
 0x217   : > { %v1784_v1 = vld [vmem:[#allocation3 + $0x18] sm:$0xff]  ;;  %v639_v11 = vrot.slane %v1786_v4, 1  ;;  %v839_v12 = vrot.slane %v1786_v4, 2 }
 0x218   : > { %v642_v8 = vrot.slane %v1784_v1, 1  ;;  %v842_v9 = vrot.slane %v1784_v1, 2 }
 0x219   : > { %v640_v20 = vsel %vm637_vm2, %v638_v5, %v639_v11  ;;  %v840_v21 = vsel %vm837_vm4, %v838_v7, %v839_v12  ;;  %v645_v32 = vsel %vm637_vm2, %v639_v11, %v644_v28  ;;  %v845_v33 = vsel %vm837_vm4, %v839_v12, %v844_v6 }
 0x21a   : > { %v643_v18 = vsel %vm637_vm2, %v641_v2, %v642_v8  ;;  %v843_v19 = vsel %vm837_vm4, %v841_v3, %v842_v9  ;;  %v647_v26 = vsel %vm637_vm2, %v642_v8, %v646_v16  ;;  %v847_v27 = vsel %vm837_vm4, %v842_v9, %v846_v25  ;;  %v1097_v3 = vld [vmem:[%s1924_s4] ss:$0 sm:$0xff] }
 0x21b   : > { %1073 = vmatprep.mubr.msk.f32.mxu1 %vm650_vm3, %v643_v18  ;;  %1095 = vmatprep.mubr.msk.f32.mxu0 %vm650_vm3, %v843_v19 }
 0x21c   : > { %720 = vmatmul.mubr.f32.vlgmr.msra.gmra.mrb[0].mxu1 %v640_v20  ;;  %919 = vmatmul.mubr.f32.vlgmr.msra.gmra.mrb[2].mxu0 %v840_v21 }
 0x21d   : > { %1278 = vmatpush1.bf16.msra.mxu1 %v1277_v15  ;;  %1074 = vmatprep.mubr.msk.f32.mxu1 %vm650_vm3, %v647_v26 }
 0x21e   : > { %1096 = vmatprep.mubr.msk.f32.mxu0 %vm650_vm3, %v847_v27  ;;  %1279 = vmatprep.subr.bf16.mxu1 %v1444_v54 }
 0x220   : > { %725 = vmatmul.mubr.f32.gmra.mrb[2].mxu1 %v645_v32  ;;  %924 = vmatmul.mubr.f32.gmra.mrb[4].mxu0 %v845_v33 }
 0x221   : > { %1281 = vmatpush1.bf16.msra.mxu1 %v1280_v29  ;;  %1075 = vmatprep.mubr.msk.f32.mxu1 %vm650_vm3, %v587_v34 }
 0x222   : > { %1282 = vmatprep.subr.bf16.mxu1 %v1444_v54 }
 0x225   : > { %1284 = vmatpush1.bf16.msra.mxu1 %v1283_v35 }
 0x226   : > { %1285 = vmatprep.subr.bf16.mxu1 %v1444_v54 }
 0x229   : > { %1287 = vmatpush1.bf16.msra.mxu1 %v1286_v38 }
 0x22a   : > { %1288 = vmatprep.subr.bf16.mxu1 %v1444_v54 }
 0x22d   : > { %1290 = vmatpush1.bf16.msra.mxu1 %v1289_v41 }
 0x22e   : > { %1291 = vmatprep.subr.bf16.mxu1 %v1444_v54 }
 0x231   : > { %1293 = vmatpush1.bf16.msra.mxu1 %v1292_v44 }
 0x232   : > { %1294 = vmatprep.subr.bf16.mxu1 %v1444_v54 }
 0x235   : > { %1296 = vmatpush1.bf16.msra.mxu1 %v1295_v47 }
 0x236   : > { %1297 = vmatprep.subr.bf16.mxu1 %v1444_v54 }
 0x239   : > { %1299 = vmatpush1.bf16.msra.mxu1 %v1298_v50 }
 0x23a   : > { %1300 = vmatprep.subr.bf16.mxu1 %v1444_v54 }
 0x23d   : > { %1302 = vmatpush1.bf16.msra.mxu1 %v1301_v53 }
 0x240   : > { %800 = vmatmul.mubr.f32.vlgmr.msra.gmra.mrb[4].mxu1 %v586_v55 }
 0x241   : > { %1076 = vmatprep.mubr.msk.f32.mxu1 %vm650_vm3, %v1784_v1 }
 0x244   : > { %805 = vmatmul.mubr.f32.gmra.mrb[6].mxu1 %v1786_v4 }
 0x2ef   : > { %v721_v56 = vpop.f32.mrb[0].mxu1  ;;  %v920_v57 = vpop.f32.mrb[2].mxu0 }
 0x2f0   : > { %v723_v58 = vpop.f32.mrb[1].mxu1  ;;  %v922_v59 = vpop.f32.mrb[3].mxu0 }
 0x2f3   : > { %v726_v60 = vpop.f32.mrb[2].mxu1  ;;  %v925_v61 = vpop.f32.mrb[4].mxu0 }
 0x2f4   : > { %v728_v62 = vpop.f32.mrb[3].mxu1  ;;  %v927_v63 = vpop.f32.mrb[5].mxu0 }
 0x313   : > { %v801_v0 = vpop.f32.mrb[4].mxu1 }
 0x314   : > { %v802_v54 = vadd.f32 %v801_v0, %v721_v56  ;;  %v803_v2 = vpop.f32.mrb[5].mxu1 }
 0x316   : > { %v929_v1 = vadd.f32 %v920_v57, %v802_v54 }
 0x317   : > { %v806_v5 = vpop.f32.mrb[6].mxu1 }
 0x318   : > { %v938_v4 = vadd.f32 %v1097_v3, %v929_v1  ;;  %v807_v7 = vadd.f32 %v806_v5, %v726_v60  ;;  %v808_v8 = vpop.f32.mrb[7].mxu1 }
 0x31a   : > { %v940_v9 = vmax.f32 %v938_v4, 0.0  ;;  %v930_v11 = vadd.f32 %v925_v61, %v807_v7 }
 0x31c   : > { %v942_v12 = vadd.f32 %v940_v9, %v1559_v10  ;;  %v939_v14 = vadd.f32 %v1097_v3, %v930_v11 }
 0x31e   : > { %945 = vst.msk [vmem:[%s217_s7] sm:$0xff] %vm944_vm5, %v942_v12  ;;  %v941_v15 = vmax.f32 %v939_v14, 0.0 }
 0x320   : > { %v943_v16 = vadd.f32 %v941_v15, %v1568_v13 }
 0x322   : > { %946 = vst.msk [vmem:[%s217_s7 + $0x8] sm:$0xff] %vm944_vm5, %v943_v16 }
 0x323   : > { %1391 = shalt.err (!%p1388_p3)
}
 0x324   : > { %s1392_s17 = scalar_lea.hbm %s1873_s12, 256  ;;  %s1396_s26 = scalar_lea.hbm %s1925_s5, 512 }
 0x325   : > { %p1393_p4 = scmp.ne.s32.totalorder %s1873_s12, %s1392_s17  ;;  %p1397_p9 = scmp.lt.u32.totalorder %s1873_s12, %s1925_s5 }
 0x326   : > { %p1398_p10 = scmp.lt.u32.totalorder %s1396_s26, %s1392_s17  ;;  %p1400_p12 = scmp.lt.u32.totalorder %s1392_s17, %s1873_s12 }
 0x327   : > { %p1394_p7 = pnand %p1393_p4, %p1516_p5 }
 0x328   : > { %p1399_p11 = por %p1398_p10, %p1397_p9 }
 0x329   : > { %p1395_p8 = pneg %p1394_p7 }
 0x32a   : > { %p1401_p13 = por %p1400_p12, %p1399_p11 }
 0x32c   : > { %p1402_p0 = pnand %p1401_p13, %p1395_p8 }
 0x32e   : > { %1405 = shalt.err (!%p1402_p0)
}
 0x32f   : > { %s1447_s7 = smov 128  }
 0x330   : > { %1334 = dma.vmem_to_hbm [thread:$0]  (%p1516_p5), %s1876_s8, 256, %s1873_s12, %s1878_s13, %s1447_s7, %s1447_s7, %s1445_s11  }
 0x331 PF: > { %p1340_p1 = scmp.ge.s32.totalorder %s1440_s21, 2  ;;  %s976_s9 = sand.u32 1, %s1428_s18  }
 0x332   : > { %s977_s10 = scalar_lea.sflag [#allocation5], %s976_s9 }
 0x333   : > { %p1337_p2 = pnand %p1340_p1, %p1520_p6 }
 0x335   : > { %1423 = dma.done.wait (!%p1337_p2), %s977_s10, 256  }
 0x336   : > { %1425 = vsyncadd (!%p1337_p2), %s977_s10, 4294967040  ;;  %p15_p3 = scmp.ge.s32.totalorder %s1503_s24, 4   ;;  %s1928_s18 = smov %s1432_s19 }
 0x337   : > { %s1929_s19 = smov %s1436_s20  ;;  %s1930_s20 = smov %s1514_s27 }
 0x338   : > { %s1931_s21 = smov %s1503_s24  ;;  %17 = sbr.rel (!%p15_p3) target bundleno = 3 (0x3), region = 80 }
 0x33f   :  { %982 = vsyncpa [#allocation5], 1 }
 0x340   :  { %984 = vsyncpa [#allocation5 + $0x1], 1 }

</bundles_post_ra>
